<compile_context>
chip_gen: v7x
topology: tpu7x:2x2x1
jax: 0.10.0
libtpu: 0.0.40
codegen_flags: <defaults>
</compile_context>

<pallas_src>
import numpy as np
from functools import partial

import jax
import jax.numpy as jnp
from jax import lax
from jax.experimental import pallas as pl
from jax.experimental.pallas import tpu as pltpu


def basic_block_kernel(xp_ref, t1_ref, b1_ref, t2_ref, b2_ref, o_ref,
                       ybuf_ref, col_ref, *, B, H):
    # xp_ref:  (B*Hp, WC)   bf16  row-padded input, flat; lane-dense (x*C+c)
    # t1_ref:  (3*WC, WC)   bf16  conv1 taps stacked over dy (BN1 scale folded)
    # b1_ref:  (1, WC)      f32   BN1 bias, tiled over W
    # t2_ref:  (3*WC, WC)   bf16  conv2 taps stacked over dy (BN2 scale folded)
    # b2_ref:  (1, WC)      f32   BN2 bias, tiled over W
    # o_ref:   (B*H, WC)    f32   output (valid rows only)
    # ybuf_ref:(B*Hp, WC)   bf16  scratch: row-padded intermediate activation
    # col_ref: (Mv, 3*WC)   bf16  scratch: im2col LHS, Mv = B*Hp - 2
    Hp = H + 2
    Mp, WC = xp_ref.shape
    Mv = Mp - 2                      # conv rows computed (incl. junk boundary rows)

    # ---- conv1 im2col: three contiguous row-shifted slabs -> K-concat LHS ----
    x1 = xp_ref[1:Mv + 1, :]         # row i+1 == x[b, h]; doubles as the residual
    col_ref[:, 0:WC] = xp_ref[0:Mv, :]
    col_ref[:, WC:2 * WC] = x1
    col_ref[:, 2 * WC:3 * WC] = xp_ref[2:Mv + 2, :]

    # ---- conv1 (+ folded BN1 scale): single (Mv,3WC)x(3WC,WC) MXU matmul ----
    acc1 = jnp.dot(col_ref[...], t1_ref[...],
                   preferred_element_type=jnp.float32)
    y = jnp.maximum(acc1 + b1_ref[...], 0.0)

    # ---- stage relu(y) into the row-padded scratch (shifted down one row);
    #      junk boundary rows land exactly on the inter-batch pad rows, which
    #      (plus the outer pad rows) are then overwritten with zeros ----
    ybuf_ref[1:Mv + 1, :] = y.astype(ybuf_ref.dtype)
    zrow = jnp.zeros((1, WC), ybuf_ref.dtype)
    for b in range(B):
        ybuf_ref[b * Hp:b * Hp + 1, :] = zrow              # top pad of batch b
        ybuf_ref[b * Hp + H + 1:b * Hp + H + 2, :] = zrow  # bottom pad of batch b

    # ---- conv2 im2col (reuse the same scratch) ----
    col_ref[:, 0:WC] = ybuf_ref[0:Mv, :]
    col_ref[:, WC:2 * WC] = ybuf_ref[1:Mv + 1, :]
    col_ref[:, 2 * WC:3 * WC] = ybuf_ref[2:Mv + 2, :]

    # ---- conv2 (+ folded BN2 scale) ----
    acc2 = jnp.dot(col_ref[...], t2_ref[...],
                   preferred_element_type=jnp.float32)

    # ---- bn2 bias + residual + relu (residual reused from the bf16 input) ----
    out = jnp.maximum(acc2 + b2_ref[...] + x1.astype(jnp.float32), 0.0)

    # ---- store only the valid H rows of each batch (skip junk boundary rows) ----
    for b in range(B):
        o_ref[b * H:(b + 1) * H, :] = out[b * Hp:b * Hp + H, :].astype(o_ref.dtype)


def _tap_matrices(w_hwio, W):
    """(3, 3, Cin, Cout) conv weights -> (3, W*Cin, W*Cout) banded tap matrices.

    T_dy[x'*Cin + cin, x*Cout + cout] = w[dy, dx, cin, cout] with x' = x+dx-1;
    out-of-range x' entries are simply absent, which implements the SAME
    zero-padding along the width dimension.
    """
    mats = []
    for dy in range(3):
        t = sum(jnp.kron(jnp.eye(W, W, k=1 - dx, dtype=w_hwio.dtype),
                         w_hwio[dy, dx])
                for dx in range(3))
        mats.append(t)
    return jnp.stack(mats)


def basic_block_pallas(x_nchw, w1_hwio, w2_hwio,
                       g1, bt1, m1, v1, g2, bt2, m2, v2, eps=1e-5):
    """BasicBlock forward (eval-mode BN, stride=1, no downsample).

    x_nchw: (B, C, H, W) float32 -> (B, C, H, W) float32.
    """
    B, C, H, W = x_nchw.shape
    Hp = H + 2
    WC = W * C
    Mv = B * Hp - 2

    # NCHW -> lane-dense flat (B*Hp, W*C), per-batch zero pad rows along H.
    x_nhwc = jnp.transpose(x_nchw, (0, 2, 3, 1))
    xp = jnp.pad(x_nhwc, ((0, 0), (1, 1), (0, 0), (0, 0)))          # rows only
    xp2d = xp.reshape(B * Hp, WC).astype(jnp.bfloat16)

    # Fold BN (inference) scale into the conv weights; keep bias separate.
    s1 = g1 / jnp.sqrt(v1 + eps)
    b1 = bt1 - m1 * s1
    s2 = g2 / jnp.sqrt(v2 + eps)
    b2 = bt2 - m2 * s2
    t1 = _tap_matrices(w1_hwio * s1[None, None, None, :], W)
    t2 = _tap_matrices(w2_hwio * s2[None, None, None, :], W)
    t1 = t1.reshape(3 * WC, WC).astype(jnp.bfloat16)     # stacked over dy for K-concat
    t2 = t2.reshape(3 * WC, WC).astype(jnp.bfloat16)
    b1t = jnp.tile(b1, W).reshape(1, WC).astype(jnp.float32)
    b2t = jnp.tile(b2, W).reshape(1, WC).astype(jnp.float32)

    kernel = partial(basic_block_kernel, B=B, H=H)

    out = pl.pallas_call(
        kernel,
        out_shape=jax.ShapeDtypeStruct((B * H, WC), jnp.float32),
        grid_spec=pltpu.PrefetchScalarGridSpec(
            num_scalar_prefetch=0,
            grid=(1,),                       # whole batch folded into matmul M
            in_specs=[
                pl.BlockSpec((B * Hp, WC), lambda i: (0, 0)),   # padded x (flat)
                pl.BlockSpec((3 * WC, WC), lambda i: (0, 0)),   # conv1 taps (stacked)
                pl.BlockSpec((1, WC), lambda i: (0, 0)),        # bn1 bias
                pl.BlockSpec((3 * WC, WC), lambda i: (0, 0)),   # conv2 taps (stacked)
                pl.BlockSpec((1, WC), lambda i: (0, 0)),        # bn2 bias
            ],
            out_specs=pl.BlockSpec((B * H, WC), lambda i: (0, 0)),
            scratch_shapes=[
                pltpu.VMEM((B * Hp, WC), jnp.bfloat16),   # padded intermediate act
                pltpu.VMEM((Mv, 3 * WC), jnp.bfloat16),   # im2col LHS (reused)
            ],
        ),
        compiler_params=pltpu.CompilerParams(
            dimension_semantics=("arbitrary",)),
    )(xp2d, t1, b1t, t2, b2t)

    # (B*H, W*C) -> NCHW
    return jnp.transpose(out.reshape(B, H, W, C), (0, 3, 1, 2))


def basic_block_ref(x_nchw, w1_hwio, w2_hwio,
                    g1, bt1, m1, v1, g2, bt2, m2, v2, eps=1e-5):
    """Pure-JAX f32 reference (matches PyTorch eval-mode BasicBlock)."""
    x = jnp.transpose(x_nchw, (0, 2, 3, 1))
    dn = ("NHWC", "HWIO", "NHWC")
    y = lax.conv_general_dilated(x, w1_hwio, (1, 1), "SAME", dimension_numbers=dn)
    y = (y - m1) / jnp.sqrt(v1 + eps) * g1 + bt1
    y = jnp.maximum(y, 0.0)
    y = lax.conv_general_dilated(y, w2_hwio, (1, 1), "SAME", dimension_numbers=dn)
    y = (y - m2) / jnp.sqrt(v2 + eps) * g2 + bt2
    y = jnp.maximum(y + x, 0.0)
    return jnp.transpose(y, (0, 3, 1, 2))


if __name__ == "__main__":
    B, C, H, W = 2, 8, 16, 16  # inplanes == planes == 8, stride=1, no downsample
    key = jax.random.PRNGKey(0)
    kx, kw1, kw2, kg1, kb1, km1, kv1, kg2, kb2, km2, kv2 = jax.random.split(key, 11)

    x = jax.random.normal(kx, (B, C, H, W), jnp.float32)

    # conv weights in HWIO layout
    w1 = jax.random.normal(kw1, (3, 3, C, C), jnp.float32) * 0.1
    w2 = jax.random.normal(kw2, (3, 3, C, C), jnp.float32) * 0.1

    # BatchNorm parameters / running stats (inference mode)
    g1 = 1.0 + 0.1 * jax.random.normal(kg1, (C,), jnp.float32)
    bt1 = 0.1 * jax.random.normal(kb1, (C,), jnp.float32)
    m1 = 0.1 * jax.random.normal(km1, (C,), jnp.float32)
    v1 = 1.0 + 0.1 * jnp.abs(jax.random.normal(kv1, (C,), jnp.float32))
    g2 = 1.0 + 0.1 * jax.random.normal(kg2, (C,), jnp.float32)
    bt2 = 0.1 * jax.random.normal(kb2, (C,), jnp.float32)
    m2 = 0.1 * jax.random.normal(km2, (C,), jnp.float32)
    v2 = 1.0 + 0.1 * jnp.abs(jax.random.normal(kv2, (C,), jnp.float32))

    out = basic_block_pallas(x, w1, w2, g1, bt1, m1, v1, g2, bt2, m2, v2)
    out = jax.block_until_ready(out)

    ref = jax.block_until_ready(
        basic_block_ref(x, w1, w2, g1, bt1, m1, v1, g2, bt2, m2, v2))
    # bf16 MXU inputs (and bf16 residual) with f32 accumulation -> bf16 tolerance.
    np.testing.assert_allclose(np.asarray(out), np.asarray(ref),
                               rtol=2e-2, atol=2e-2)

    print("KERNEL_OK")
</pallas_src>

<mosaic_0001>
module attributes {stable_mosaic.version = 11 : i64} {
  func.func @basic_block_kernel(%arg0: i32, %arg1: memref<36x128xbf16, #tpu.memory_space<vmem>>, %arg2: memref<384x128xbf16, #tpu.memory_space<vmem>>, %arg3: memref<1x128xf32, #tpu.memory_space<vmem>>, %arg4: memref<384x128xbf16, #tpu.memory_space<vmem>>, %arg5: memref<1x128xf32, #tpu.memory_space<vmem>>, %arg6: memref<32x128xf32, #tpu.memory_space<vmem>>, %arg7: memref<36x128xbf16, #tpu.memory_space<vmem>>, %arg8: memref<34x384xbf16, #tpu.memory_space<vmem>>) attributes {dimension_semantics = [#tpu.dimension_semantics<arbitrary>], iteration_bounds = array<i64: 1>, scalar_prefetch = 0 : i64, scratch_operands = 2 : i64, tpu.core_type = #tpu.core_type<tc>, window_params = [{pipeline_mode = #tpu.pipeline_mode<synchronous>, transform_indices = @transform_0, window_bounds = array<i64: 36, 128>}, {pipeline_mode = #tpu.pipeline_mode<synchronous>, transform_indices = @transform_1, window_bounds = array<i64: 384, 128>}, {pipeline_mode = #tpu.pipeline_mode<synchronous>, transform_indices = @transform_2, window_bounds = array<i64: 1, 128>}, {pipeline_mode = #tpu.pipeline_mode<synchronous>, transform_indices = @transform_3, window_bounds = array<i64: 384, 128>}, {pipeline_mode = #tpu.pipeline_mode<synchronous>, transform_indices = @transform_4, window_bounds = array<i64: 1, 128>}, {pipeline_mode = #tpu.pipeline_mode<synchronous>, transform_indices = @transform_5, window_bounds = array<i64: 32, 128>}]} {
    %c1 = arith.constant 1 : index
    %c0 = arith.constant 0 : index
    %0 = vector.load %arg1[%c1, %c0] : memref<36x128xbf16, #tpu.memory_space<vmem>>, vector<34x128xbf16>
    %c0_0 = arith.constant 0 : index
    %c0_1 = arith.constant 0 : index
    %1 = vector.load %arg1[%c0_0, %c0_1] : memref<36x128xbf16, #tpu.memory_space<vmem>>, vector<34x128xbf16>
    %c0_2 = arith.constant 0 : index
    %c0_3 = arith.constant 0 : index
    %2 = vector.load %arg8[%c0_2, %c0_3] : memref<34x384xbf16, #tpu.memory_space<vmem>>, vector<34x128xbf16>
    tpu.vector_store %arg8[%c0_2, %c0_3], %1 {strides = array<i32>} : memref<34x384xbf16, #tpu.memory_space<vmem>>, vector<34x128xbf16>,
    %c0_4 = arith.constant 0 : index
    %c128 = arith.constant 128 : index
    %3 = vector.load %arg8[%c0_4, %c128] : memref<34x384xbf16, #tpu.memory_space<vmem>>, vector<34x128xbf16>
    tpu.vector_store %arg8[%c0_4, %c128], %0 {strides = array<i32>} : memref<34x384xbf16, #tpu.memory_space<vmem>>, vector<34x128xbf16>,
    %c2 = arith.constant 2 : index
    %c0_5 = arith.constant 0 : index
    %4 = vector.load %arg1[%c2, %c0_5] : memref<36x128xbf16, #tpu.memory_space<vmem>>, vector<34x128xbf16>
    %c0_6 = arith.constant 0 : index
    %c256 = arith.constant 256 : index
    %5 = vector.load %arg8[%c0_6, %c256] : memref<34x384xbf16, #tpu.memory_space<vmem>>, vector<34x128xbf16>
    tpu.vector_store %arg8[%c0_6, %c256], %4 {strides = array<i32>} : memref<34x384xbf16, #tpu.memory_space<vmem>>, vector<34x128xbf16>,
    %c0_7 = arith.constant 0 : index
    %c0_8 = arith.constant 0 : index
    %6 = vector.load %arg8[%c0_7, %c0_8] : memref<34x384xbf16, #tpu.memory_space<vmem>>, vector<34x384xbf16>
    %c0_9 = arith.constant 0 : index
    %c0_10 = arith.constant 0 : index
    %7 = vector.load %arg2[%c0_9, %c0_10] : memref<384x128xbf16, #tpu.memory_space<vmem>>, vector<384x128xbf16>
    %cst = arith.constant dense<0.000000e+00> : vector<34x128xf32>
    %8 = tpu.matmul %6, %7, %cst {dimension_numbers = #tpu.dot_dimension_numbers<[1], [0], [0], [1], [0, 0, 1, 1], [], []>} : vector<34x384xbf16>, vector<384x128xbf16>, vector<34x128xf32> -> vector<34x128xf32>
    %c0_11 = arith.constant 0 : index
    %c0_12 = arith.constant 0 : index
    %9 = vector.load %arg3[%c0_11, %c0_12] : memref<1x128xf32, #tpu.memory_space<vmem>>, vector<1x128xf32>
    %10 = vector.broadcast %9 : vector<1x128xf32> to vector<34x128xf32>
    %11 = arith.addf %8, %10 : vector<34x128xf32>
    %cst_13 = arith.constant 0.000000e+00 : f32
    %12 = vector.broadcast %cst_13 : f32 to vector<34x128xf32>
    %13 = arith.maximumf %11, %12 : vector<34x128xf32>
    %14 = arith.truncf %13 : vector<34x128xf32> to vector<34x128xbf16>
    %c1_14 = arith.constant 1 : index
    %c0_15 = arith.constant 0 : index
    %15 = vector.load %arg7[%c1_14, %c0_15] : memref<36x128xbf16, #tpu.memory_space<vmem>>, vector<34x128xbf16>
    tpu.vector_store %arg7[%c1_14, %c0_15], %14 {strides = array<i32>} : memref<36x128xbf16, #tpu.memory_space<vmem>>, vector<34x128xbf16>,
    %cst_16 = arith.constant 0.000000e+00 : bf16
    %16 = vector.broadcast %cst_16 : bf16 to vector<1x128xbf16>
    %c0_17 = arith.constant 0 : index
    %c0_18 = arith.constant 0 : index
    %17 = vector.load %arg7[%c0_17, %c0_18] : memref<36x128xbf16, #tpu.memory_space<vmem>>, vector<1x128xbf16>
    tpu.vector_store %arg7[%c0_17, %c0_18], %16 {strides = array<i32>} : memref<36x128xbf16, #tpu.memory_space<vmem>>, vector<1x128xbf16>,
    %c17 = arith.constant 17 : index
    %c0_19 = arith.constant 0 : index
    %18 = vector.load %arg7[%c17, %c0_19] : memref<36x128xbf16, #tpu.memory_space<vmem>>, vector<1x128xbf16>
    tpu.vector_store %arg7[%c17, %c0_19], %16 {strides = array<i32>} : memref<36x128xbf16, #tpu.memory_space<vmem>>, vector<1x128xbf16>,
    %c18 = arith.constant 18 : index
    %c0_20 = arith.constant 0 : index
    %19 = vector.load %arg7[%c18, %c0_20] : memref<36x128xbf16, #tpu.memory_space<vmem>>, vector<1x128xbf16>
    tpu.vector_store %arg7[%c18, %c0_20], %16 {strides = array<i32>} : memref<36x128xbf16, #tpu.memory_space<vmem>>, vector<1x128xbf16>,
    %c35 = arith.constant 35 : index
    %c0_21 = arith.constant 0 : index
    %20 = vector.load %arg7[%c35, %c0_21] : memref<36x128xbf16, #tpu.memory_space<vmem>>, vector<1x128xbf16>
    tpu.vector_store %arg7[%c35, %c0_21], %16 {strides = array<i32>} : memref<36x128xbf16, #tpu.memory_space<vmem>>, vector<1x128xbf16>,
    %c0_22 = arith.constant 0 : index
    %c0_23 = arith.constant 0 : index
    %21 = vector.load %arg7[%c0_22, %c0_23] : memref<36x128xbf16, #tpu.memory_space<vmem>>, vector<34x128xbf16>
    %c0_24 = arith.constant 0 : index
    %c0_25 = arith.constant 0 : index
    %22 = vector.load %arg8[%c0_24, %c0_25] : memref<34x384xbf16, #tpu.memory_space<vmem>>, vector<34x128xbf16>
    tpu.vector_store %arg8[%c0_24, %c0_25], %21 {strides = array<i32>} : memref<34x384xbf16, #tpu.memory_space<vmem>>, vector<34x128xbf16>,
    %c1_26 = arith.constant 1 : index
    %c0_27 = arith.constant 0 : index
    %23 = vector.load %arg7[%c1_26, %c0_27] : memref<36x128xbf16, #tpu.memory_space<vmem>>, vector<34x128xbf16>
    %c0_28 = arith.constant 0 : index
    %c128_29 = arith.constant 128 : index
    %24 = vector.load %arg8[%c0_28, %c128_29] : memref<34x384xbf16, #tpu.memory_space<vmem>>, vector<34x128xbf16>
    tpu.vector_store %arg8[%c0_28, %c128_29], %23 {strides = array<i32>} : memref<34x384xbf16, #tpu.memory_space<vmem>>, vector<34x128xbf16>,
    %c2_30 = arith.constant 2 : index
    %c0_31 = arith.constant 0 : index
    %25 = vector.load %arg7[%c2_30, %c0_31] : memref<36x128xbf16, #tpu.memory_space<vmem>>, vector<34x128xbf16>
    %c0_32 = arith.constant 0 : index
    %c256_33 = arith.constant 256 : index
    %26 = vector.load %arg8[%c0_32, %c256_33] : memref<34x384xbf16, #tpu.memory_space<vmem>>, vector<34x128xbf16>
    tpu.vector_store %arg8[%c0_32, %c256_33], %25 {strides = array<i32>} : memref<34x384xbf16, #tpu.memory_space<vmem>>, vector<34x128xbf16>,
    %c0_34 = arith.constant 0 : index
    %c0_35 = arith.constant 0 : index
    %27 = vector.load %arg8[%c0_34, %c0_35] : memref<34x384xbf16, #tpu.memory_space<vmem>>, vector<34x384xbf16>
    %c0_36 = arith.constant 0 : index
    %c0_37 = arith.constant 0 : index
    %28 = vector.load %arg4[%c0_36, %c0_37] : memref<384x128xbf16, #tpu.memory_space<vmem>>, vector<384x128xbf16>
    %cst_38 = arith.constant dense<0.000000e+00> : vector<34x128xf32>
    %29 = tpu.matmul %27, %28, %cst_38 {dimension_numbers = #tpu.dot_dimension_numbers<[1], [0], [0], [1], [0, 0, 1, 1], [], []>} : vector<34x384xbf16>, vector<384x128xbf16>, vector<34x128xf32> -> vector<34x128xf32>
    %c0_39 = arith.constant 0 : index
    %c0_40 = arith.constant 0 : index
    %30 = vector.load %arg5[%c0_39, %c0_40] : memref<1x128xf32, #tpu.memory_space<vmem>>, vector<1x128xf32>
    %31 = vector.broadcast %30 : vector<1x128xf32> to vector<34x128xf32>
    %32 = arith.addf %29, %31 : vector<34x128xf32>
    %33 = arith.extf %0 : vector<34x128xbf16> to vector<34x128xf32>
    %34 = arith.addf %32, %33 : vector<34x128xf32>
    %cst_41 = arith.constant 0.000000e+00 : f32
    %35 = vector.broadcast %cst_41 : f32 to vector<34x128xf32>
    %36 = arith.maximumf %34, %35 : vector<34x128xf32>
    %37 = vector.extract_strided_slice %36 {offsets = [0, 0], sizes = [16, 128], strides = [1, 1]} : vector<34x128xf32> to vector<16x128xf32>
    %c0_42 = arith.constant 0 : index
    %c0_43 = arith.constant 0 : index
    %38 = vector.load %arg6[%c0_42, %c0_43] : memref<32x128xf32, #tpu.memory_space<vmem>>, vector<16x128xf32>
    tpu.vector_store %arg6[%c0_42, %c0_43], %37 {strides = array<i32>} : memref<32x128xf32, #tpu.memory_space<vmem>>, vector<16x128xf32>,
    %39 = vector.extract_strided_slice %36 {offsets = [18, 0], sizes = [16, 128], strides = [1, 1]} : vector<34x128xf32> to vector<16x128xf32>
    %c16 = arith.constant 16 : index
    %c0_44 = arith.constant 0 : index
    %40 = vector.load %arg6[%c16, %c0_44] : memref<32x128xf32, #tpu.memory_space<vmem>>, vector<16x128xf32>
    tpu.vector_store %arg6[%c16, %c0_44], %39 {strides = array<i32>} : memref<32x128xf32, #tpu.memory_space<vmem>>, vector<16x128xf32>,
    return
  }
  func.func @transform_0(%arg0: i32) -> (i32, i32) {
    %c0_i32 = arith.constant 0 : i32
    %c0_i32_0 = arith.constant 0 : i32
    %c0_i32_1 = arith.constant 0 : i32
    return %c0_i32, %c0_i32_0 : i32, i32
  }
  func.func @transform_1(%arg0: i32) -> (i32, i32) {
    %c0_i32 = arith.constant 0 : i32
    %c0_i32_0 = arith.constant 0 : i32
    %c0_i32_1 = arith.constant 0 : i32
    return %c0_i32, %c0_i32_0 : i32, i32
  }
  func.func @transform_2(%arg0: i32) -> (i32, i32) {
    %c0_i32 = arith.constant 0 : i32
    %c0_i32_0 = arith.constant 0 : i32
    %c0_i32_1 = arith.constant 0 : i32
    return %c0_i32, %c0_i32_0 : i32, i32
  }
  func.func @transform_3(%arg0: i32) -> (i32, i32) {
    %c0_i32 = arith.constant 0 : i32
    %c0_i32_0 = arith.constant 0 : i32
    %c0_i32_1 = arith.constant 0 : i32
    return %c0_i32, %c0_i32_0 : i32, i32
  }
  func.func @transform_4(%arg0: i32) -> (i32, i32) {
    %c0_i32 = arith.constant 0 : i32
    %c0_i32_0 = arith.constant 0 : i32
    %c0_i32_1 = arith.constant 0 : i32
    return %c0_i32, %c0_i32_0 : i32, i32
  }
  func.func @transform_5(%arg0: i32) -> (i32, i32) {
    %c0_i32 = arith.constant 0 : i32
    %c0_i32_0 = arith.constant 0 : i32
    %c0_i32_1 = arith.constant 0 : i32
    return %c0_i32, %c0_i32_0 : i32, i32
  }
}

</mosaic_0001>

<bundles_post_ra>
// kernel: tpu_custom_call.1
= control target key start
LH: loop header
LB: loop body
LE: loop exit
PB: predicated region body
PF: predicated region fallthrough
CT: control target
= control target key end

     0   :  { %10 = vsyncpa [#allocation5], 0  ;;  %s1836_s0 = inlined_call_operand.hbm [shape: bf16[36,128], index: 0, kind: input, shape index: {}]   ;;  %s1837_s1 = inlined_call_operand.hbm [shape: bf16[384,128], index: 1, kind: input, shape index: {}]   ;;  %s1838_s2 = inlined_call_operand.vmem [shape: f32[1,128], index: 2, kind: input, shape index: {}]   ;;  %s1839_s3 = inlined_call_operand.hbm [shape: bf16[384,128], index: 3, kind: input, shape index: {}]   ;;  %s1840_s4 = inlined_call_operand.vmem [shape: f32[1,128], index: 4, kind: input, shape index: {}]   ;;  %s1841_s5 = inlined_call_operand.hbm [shape: f32[32,128], index: 5, kind: output, shape index: {}]  }
   0x1   :  { %11 = vsyncpa [#allocation8], 0 }
   0x2   :  { %12 = vsyncpa [#allocation6], 0  ;;  %s1573_s18 = smov [#allocation7]   ;;  %s1574_s20 = smov [#allocation4]  }
   0x3   :  { %s30_s19 = sshll.u32 %s1573_s18, 4  ;;  %s18_s21 = sshll.u32 %s1574_s20, 4  ;;  %s31_s19 = int_to_ptr.vmem [resolvable:$true] %s30_s19  ;;  %s1613_s21 = int_to_ptr.vmem [resolvable:$true] %s18_s21 }
   0x4   :  { %s1479_s24 = scalar_lea.hbm %s1837_s1, 3072 }
   0x5   :  { %p1480_p0 = scmp.ne.s32.totalorder %s1837_s1, %s1479_s24  ;;  %p1483_p1 = scmp.lt.u32.totalorder %s1479_s24, %s1837_s1 }
   0x7   :  { %p1485_p2 = pnand %p1483_p1, %p1480_p0 }
   0x9   :  { %1488 = shalt.err (!%p1485_p2)
}
   0xa   :  { %s1489_s29 = scalar_lea.vmem %s31_s19, 3072  ;;  %p1494_p4 = scmp.lt.s32.totalorder %s31_s19, %s31_s19 }
   0xb   :  { %p1490_p3 = scmp.ne.s32.totalorder %s31_s19, %s1489_s29  ;;  %p1495_p5 = scmp.lt.s32.totalorder %s1489_s29, %s1489_s29 }
   0xd   :  { %p1496_p6 = por %p1495_p5, %p1494_p4 }
   0xf   :  { %p1497_p7 = pnand %p1496_p6, %p1490_p3 }
  0x11   :  { %1500 = shalt.err (!%p1497_p7)
}
  0x12   :  { %s1575_s30 = smov 64   ;;  %s1576_s6 = smov 4  }
  0x13   :  { %36 = dma.hbm_to_vmem [thread:$0]  %s1837_s1, 3072, %s31_s19, [#allocation8], %s1575_s30, %s1575_s30, %s1576_s6  }
  0x14   :  { %s1501_s11 = scalar_lea.hbm %s1836_s0, 320 }
  0x15   :  { %p1502_p8 = scmp.ne.s32.totalorder %s1836_s0, %s1501_s11  ;;  %p1505_p9 = scmp.lt.u32.totalorder %s1501_s11, %s1836_s0 }
  0x17   :  { %p1507_p10 = pnand %p1505_p9, %p1502_p8 }
  0x19   :  { %1510 = shalt.err (!%p1507_p10)
}
  0x1a   :  { %s1511_s16 = scalar_lea.vmem %s1613_s21, 320  ;;  %p1516_p12 = scmp.lt.s32.totalorder %s1613_s21, %s1613_s21 }
  0x1b   :  { %p1512_p11 = scmp.ne.s32.totalorder %s1613_s21, %s1511_s16  ;;  %p1517_p13 = scmp.lt.s32.totalorder %s1511_s16, %s1511_s16 }
  0x1d   :  { %p1518_p0 = por %p1517_p13, %p1516_p12 }
  0x1f   :  { %p1519_p1 = pnand %p1518_p0, %p1512_p11 }
  0x21   :  { %1522 = shalt.err (!%p1519_p1)
}
  0x22   :  { %24 = dma.hbm_to_vmem [thread:$0]  %s1836_s0, 320, %s1613_s21, [#allocation5], %s1575_s30, %s1575_s30, %s1576_s6  }
  0x23   :  { %s1577_s18 = smov [#allocation9]   ;;  %s1523_s23 = scalar_lea.hbm %s1839_s3, 3072 }
  0x24   :  { %s44_s19 = sshll.u32 %s1577_s18, 4  ;;  %p1524_p2 = scmp.ne.s32.totalorder %s1839_s3, %s1523_s23  ;;  %s45_s19 = int_to_ptr.vmem [resolvable:$true] %s44_s19 }
  0x25   :  { %p1527_p3 = scmp.lt.u32.totalorder %s1523_s23, %s1839_s3 }
  0x27   :  { %p1529_p4 = pnand %p1527_p3, %p1524_p2 }
  0x29   :  { %1532 = shalt.err (!%p1529_p4)
}
  0x2a   :  { %s1533_s28 = scalar_lea.vmem %s45_s19, 3072  ;;  %p1538_p6 = scmp.lt.s32.totalorder %s45_s19, %s45_s19 }
  0x2b   :  { %p1534_p5 = scmp.ne.s32.totalorder %s45_s19, %s1533_s28  ;;  %p1539_p7 = scmp.lt.s32.totalorder %s1533_s28, %s1533_s28 }
  0x2d   :  { %p1540_p8 = por %p1539_p7, %p1538_p6 }
  0x2f   :  { %p1541_p9 = pnand %p1540_p8, %p1534_p5 }
  0x31   :  { %1544 = shalt.err (!%p1541_p9)
}
  0x32   :  { %50 = dma.hbm_to_vmem [thread:$0]  %s1839_s3, 3072, %s45_s19, [#allocation8], %s1575_s30, %s1575_s30, %s1576_s6  }
  0x33   :  { %1567 = dma.done.wait [#allocation5], 320  }
  0x34   :  { %1568 = vsyncadd [#allocation5], 4294966976 }
  0x35   :  { %1569 = dma.done.wait [#allocation8], 6144  }
  0x36   :  { %1570 = vsyncadd [#allocation8], 4294961152  ;;  %v1578_v0 = vmov 0.0   ;;  %vm1579_vm0 = vmmov 0   ;;  %v1409_v1 = vld [vmem:[#allocation7 + $0x40] sm:$0xff]   ;;  %v1412_v4 = vld [vmem:[#allocation7 + $0x48] sm:$0xff]  }
  0x37   :  { %1343 = vmatprep.subr.bf16.mxu1 %v1578_v0  ;;  %1359 = vmatprep.mubr.msk.bf16.mxu1 %vm1579_vm0, %v1578_v0  ;;  %v1410_v2 = vld [vmem:[#allocation7] sm:$0xff]   ;;  %v1413_v5 = vld [vmem:[#allocation7 + $0x8] sm:$0xff]   ;;  %v1415_v7 = vld [vmem:[#allocation7 + $0x50] sm:$0xff]   ;;  %vm74_vm1 = vsmask.f32 3328  ;;  %vm146_vm3 = vcmask 1042432  }
  0x38   :  { %1253 = vmatprep.subr.bf16.mxu0 %v1409_v1  ;;  %v1411_v3 = vld [vmem:[#allocation7 + $0x80] sm:$0xff]   ;;  %v1414_v6 = vld [vmem:[#allocation7 + $0x88] sm:$0xff]   ;;  %v1416_v8 = vld [vmem:[#allocation7 + $0x10] sm:$0xff]   ;;  %vm75_vm2 = vsmask.f32 7440  ;;  %vm147_vm4 = vcmask 1046532  }
  0x39   :  { %1254 = vmatpush3.bf16.msra.mxu0 %v1410_v2  ;;  %1344 = vmatpush3.bf16.msra.mxu1 %v1411_v3  ;;  %v1417_v9 = vld [vmem:[#allocation7 + $0x90] sm:$0xff]   ;;  %v1418_v10 = vld [vmem:[#allocation7 + $0x58] sm:$0xff]   ;;  %v1421_v13 = vld [vmem:[#allocation7 + $0x60] sm:$0xff]   ;;  %vm609_vm7 = vcmask 1043456   ;;  %vm610_vm8 = vsmask.f32 7938 }
  0x3a   :  { %1255 = vmatprep.subr.bf16.mxu0 %v1412_v4  ;;  %1345 = vmatprep.subr.bf16.mxu1 %v1578_v0  ;;  %v1419_v11 = vld [vmem:[#allocation7 + $0x18] sm:$0xff]   ;;  %v1422_v14 = vld [vmem:[#allocation7 + $0x20] sm:$0xff]   ;;  %v1424_v16 = vld [vmem:[#allocation7 + $0x68] sm:$0xff]   ;;  %vm558_vm9 = vsmask.f32 256  ;;  %vm624_vm13 = vcmask 1040384  }
  0x3b   :  { %v1420_v12 = vld [vmem:[#allocation7 + $0x98] sm:$0xff]   ;;  %v1423_v15 = vld [vmem:[#allocation7 + $0xa0] sm:$0xff]   ;;  %v1425_v17 = vld [vmem:[#allocation7 + $0x28] sm:$0xff]   ;;  %vm559_vm10 = vsmask.f32 4368 }
  0x3c   :  { %v1426_v18 = vld [vmem:[#allocation7 + $0xa8] sm:$0xff]   ;;  %v1427_v19 = vld [vmem:[#allocation7 + $0x70] sm:$0xff]   ;;  %v1430_v22 = vld [vmem:[#allocation7 + $0x78] sm:$0xff]   ;;  %vm619_vm15 = vsmask.f32 1280 }
  0x3d   :  { %1256 = vmatpush3.bf16.msra.mxu0 %v1413_v5  ;;  %1346 = vmatpush3.bf16.msra.mxu1 %v1414_v6  ;;  %v1428_v20 = vld [vmem:[#allocation7 + $0x30] sm:$0xff]   ;;  %v1673_v23 = vld [vmem:[#allocation4] sm:$0xf]  ;;  %v1431_v30 = vld [vmem:[#allocation7 + $0x38] sm:$0xff]  }
  0x3e   :  { %1257 = vmatprep.subr.bf16.mxu0 %v1415_v7  ;;  %1347 = vmatprep.subr.bf16.mxu1 %v1578_v0  ;;  %v1429_v21 = vld [vmem:[#allocation7 + $0xb0] sm:$0xff]   ;;  %69 = vst [vmem:[#allocation3] sm:$0xf] %v1673_v23  ;;  %v78_v26 = vshrl.u32 %v1673_v23, 16  ;;  %v81_v27 = vshll.u32 %v1673_v23, 16  ;;  %v1434_v37 = vld [vmem:[#allocation7 + $0xb8] sm:$0xff]   ;;  %vm1691_vm5 = vmor %vm146_vm3, %vm147_vm4 }
  0x3f   :  { %v1675_v24 = vld [vmem:[#allocation4 + $0x4] sm:$0xf]  ;;  %v1677_v25 = vld [vmem:[#allocation4 + $0x8] sm:$0xf]  ;;  %v136_v38 = vld [vmem:[#allocation4] sm:$0xe] }
  0x40   :  { %70 = vst [vmem:[#allocation3 + $0xc] sm:$0xf] %v1675_v24  ;;  %v87_v28 = vshll.u32 %v1675_v24, 16  ;;  %v91_v29 = vshrl.u32 %v1675_v24, 16  ;;  %71 = vst [vmem:[#allocation3 + $0x18] sm:$0xf] %v1677_v25 }
  0x41   :  { %1258 = vmatpush3.bf16.msra.mxu0 %v1416_v8  ;;  %1348 = vmatpush3.bf16.msra.mxu1 %v1417_v9  ;;  %v97_v31 = vshll.u32 %v1677_v25, 16  ;;  %v101_v32 = vshrl.u32 %v1677_v25, 16  ;;  %v80_v33 = vrot.slane %v78_v26, 4  ;;  %v83_v34 = vrot.slane %v81_v27, 5  ;;  %v137_v41 = vld [vmem:[#allocation4 + $0x4] sm:$0xf]  ;;  %vm1702_vm6 = vmor %vm74_vm1, %vm75_vm2 }
  0x42   :  { %1259 = vmatprep.subr.bf16.mxu0 %v1418_v10  ;;  %1349 = vmatprep.subr.bf16.mxu1 %v1578_v0  ;;  %v89_v35 = vrot.slane %v87_v28, 5  ;;  %v93_v36 = vrot.slane %v91_v29, 4  ;;  %v138_v42 = vld [vmem:[#allocation4 + $0x8] sm:$0xf]  ;;  %v1173_v46 = vrot.slane %v136_v38, 9  ;;  %v151_v47 = vrot.slane %v137_v41, 5  ;;  %vm1750_vm11 = vmand %vm609_vm7, %vm610_vm8 }
  0x43   :  { %v99_v39 = vrot.slane %v97_v31, 5  ;;  %v103_v40 = vrot.slane %v101_v32, 4  ;;  %v84_v44 = vor.u32 %v83_v34, %v80_v33  ;;  %v1695_v48 = vld [vmem:[#allocation4 + $0xc] sm:$0xf]  ;;  %v1697_v49 = vld [vmem:[#allocation4 + $0x10] sm:$0x3]  ;;  %vm1757_vm12 = vmor %vm558_vm9, %vm559_vm10 }
  0x44   :  { %v94_v45 = vor.u32 %v93_v36, %v89_v35  ;;  %v154_v52 = vrot.slane %v138_v42, 5  ;;  %72 = vst [vmem:[#allocation3 + $0x24] sm:$0xf] %v1695_v48  ;;  %v107_v53 = vshll.u32 %v1695_v48, 16  ;;  %v111_v54 = vshrl.u32 %v1695_v48, 16  ;;  %v1445_v36 = vld [vmem:[#allocation9 + $0x40] sm:$0xff]   ;;  %vm625_vm14 = vmand %vm624_vm13, %vm558_vm9 }
  0x45   :  { %1260 = vmatpush3.bf16.msra.mxu0 %v1419_v11  ;;  %1350 = vmatpush3.bf16.msra.mxu1 %v1420_v12  ;;  %v104_v51 = vor.u32 %v103_v40, %v99_v39  ;;  %v139_v55 = vld [vmem:[#allocation4 + $0xc] sm:$0xf]  ;;  %v85_v56 = vrot.slane %v84_v44, 4  ;;  %v152_v58 = vsel %vm1691_vm5, %v1173_v46, %v151_v47  ;;  %v153_v59 = vrot.slane %v151_v47, 4  ;;  %v140_v60 = vld [vmem:[#allocation4 + $0x10] sm:$0x3]  ;;  %vm1774_vm2 = vmand %vm624_vm13, %vm610_vm8 }
  0x46   :  { %1261 = vmatprep.subr.bf16.mxu0 %v1421_v13  ;;  %1351 = vmatprep.subr.bf16.mxu1 %v1578_v0  ;;  %v95_v57 = vrot.slane %v94_v45, 4  ;;  %168 = vst [vmem:[#allocation3 + $0x8] sm:$0xf] %v152_v58  ;;  %v109_v62 = vrot.slane %v107_v53, 5  ;;  %v113_v63 = vrot.slane %v111_v54, 4  ;;  %v117_v1 = vshll.u32 %v1697_v49, 16 }
  0x47   :  { %v105_v61 = vrot.slane %v104_v51, 4  ;;  %v68_v2 = vld [vmem:[#allocation4 + $0x10] sm:$0x1]  ;;  %v90_v3 = vsel %vm1702_vm6, %v85_v56, %v89_v35  ;;  %v155_v5 = vsel %vm1691_vm5, %v153_v59, %v154_v52  ;;  %v156_v6 = vrot.slane %v154_v52, 4  ;;  %v1444_v35 = vld [vmem:[#allocation9 + $0x80] sm:$0xff]   ;;  %v1447_v38 = vld [vmem:[#allocation9 + $0x88] sm:$0xff]  }
  0x48   :  { %v100_v4 = vsel %vm1702_vm6, %v95_v57, %v99_v39  ;;  %73 = vst [vmem:[#allocation3 + $0x30] sm:$0x1] %v68_v2  ;;  %131 = vst [vmem:[#allocation3 + $0x4] sm:$0xf] %v90_v3  ;;  %v114_v8 = vor.u32 %v113_v63, %v109_v62  ;;  %v119_v9 = vrot.slane %v117_v1, 5  ;;  %v157_v10 = vrot.slane %v139_v55, 5 }
  0x49   :  { %1262 = vmatpush3.bf16.msra.mxu0 %v1422_v14  ;;  %1352 = vmatpush3.bf16.msra.mxu1 %v1423_v15  ;;  %132 = vst [vmem:[#allocation3 + $0x10] sm:$0xf] %v100_v4  ;;  %169 = vst [vmem:[#allocation3 + $0x14] sm:$0xf] %v155_v5  ;;  %v110_v7 = vsel %vm1702_vm6, %v105_v61, %v109_v62  ;;  %v160_v11 = vrot.slane %v140_v60, 5  ;;  %v121_v12 = vshrl.u32 %v1697_v49, 16 }
  0x4a   :  { %1263 = vmatprep.subr.bf16.mxu0 %v1424_v16  ;;  %1353 = vmatprep.subr.bf16.mxu1 %v1578_v0  ;;  %133 = vst [vmem:[#allocation3 + $0x1c] sm:$0xf] %v110_v7  ;;  %v115_v13 = vrot.slane %v114_v8, 4  ;;  %v158_v14 = vsel %vm1691_vm5, %v156_v6, %v157_v10  ;;  %v159_v15 = vrot.slane %v157_v10, 4  ;;  %v1435_v26 = vld [vmem:[#allocation3] ss:$12 sps:$4 sm:$0xff]  }
  0x4b   :  { %170 = vst [vmem:[#allocation3 + $0x20] sm:$0xf] %v158_v14  ;;  %v123_v16 = vrot.slane %v121_v12, 4  ;;  %v1439_v29 = vld [vmem:[#allocation3 + $0x18] ss:$12 sps:$4 sm:$0xff]   ;;  %v1453_v45 = vld [vmem:[#allocation9 + $0x98] sm:$0xff]  }
  0x4c   :  { %v1448_v39 = vld [vmem:[#allocation9 + $0x48] sm:$0xff]   ;;  %v1450_v41 = vld [vmem:[#allocation9 + $0x90] sm:$0xff]   ;;  %v1454_v46 = vld [vmem:[#allocation9 + $0x58] sm:$0xff]   ;;  %vm633_vm1 = vcmask 1041409   ;;  %vm618_vm3 = vcmask 1041408  }
  0x4d   :  { %1264 = vmatpush3.bf16.msra.mxu0 %v1425_v17  ;;  %1354 = vmatpush3.bf16.msra.mxu1 %v1426_v18  ;;  %v162_v17 = vrot.slane %v160_v11, 4  ;;  %v120_v18 = vsel %vm1702_vm6, %v115_v13, %v119_v9  ;;  %v1449_v40 = vld [vmem:[#allocation9 + $0x8] sm:$0xff]   ;;  %v1451_v42 = vld [vmem:[#allocation9 + $0x50] sm:$0xff]   ;;  %v1455_v47 = vld [vmem:[#allocation9 + $0x18] sm:$0xff]   ;;  %vm638_vm8 = vsmask.f32 7942 }
  0x4e   :  { %1265 = vmatprep.subr.bf16.mxu0 %v1427_v19  ;;  %1355 = vmatprep.subr.bf16.mxu1 %v1578_v0  ;;  %v161_v19 = vsel %vm1691_vm5, %v159_v15, %v160_v11  ;;  %134 = vst [vmem:[#allocation3 + $0x28] sm:$0xf] %v120_v18  ;;  %v1452_v44 = vld [vmem:[#allocation9 + $0x10] sm:$0xff]   ;;  %v1456_v51 = vld [vmem:[#allocation9 + $0xa0] sm:$0xff]   ;;  %v1459_v54 = vld [vmem:[#allocation9 + $0xa8] sm:$0xff]  }
  0x4f   :  { %171 = vst [vmem:[#allocation3 + $0x2c] sm:$0xf] %v161_v19  ;;  %172 = vst [vmem:[#allocation3 + $0x38] sm:$0x1] %v162_v17  ;;  %v1457_v52 = vld [vmem:[#allocation9 + $0x60] sm:$0xff]   ;;  %v1460_v55 = vld [vmem:[#allocation9 + $0x68] sm:$0xff]  }
  0x50   :  { %v1436_v27 = vld [vmem:[#allocation3 + $0x8] ss:$12 sps:$4 sm:$0xff]   ;;  %v1461_v56 = vld [vmem:[#allocation9 + $0x28] sm:$0xff]   ;;  %v1462_v57 = vld [vmem:[#allocation9 + $0xb0] sm:$0xff]  }
  0x51   :  { %1266 = vmatpush3.bf16.msra.mxu0 %v1428_v20  ;;  %1356 = vmatpush3.bf16.msra.mxu1 %v1429_v21  ;;  %v124_v20 = vor.u32 %v123_v16, %v119_v9  ;;  %v1432_v21 = vld [vmem:[#allocation3 + $0x4] ss:$12 sps:$4 sm:$0xff]   ;;  %v1465_v60 = vld [vmem:[#allocation9 + $0xb8] sm:$0xff]   ;;  %vm634_vm4 = vmand %vm633_vm1, %vm619_vm15 }
  0x52   :  { %1267 = vmatprep.subr.bf16.mxu0 %v1430_v22  ;;  %1357 = vmatprep.subr.bf16.mxu1 %v1578_v0  ;;  %v1458_v53 = vld [vmem:[#allocation9 + $0x20] sm:$0xff]   ;;  %v1463_v58 = vld [vmem:[#allocation9 + $0x70] sm:$0xff]   ;;  %v1466_v61 = vld [vmem:[#allocation9 + $0x78] sm:$0xff]  }
  0x53   :  { %v125_v22 = vrot.slane %v124_v20, 4  ;;  %457 = vmatprep.mubr.bf16.mxu0 %v1432_v21  ;;  %v1464_v59 = vld [vmem:[#allocation9 + $0x30] sm:$0xff]   ;;  %v1467_v62 = vld [vmem:[#allocation9 + $0x38] sm:$0xff]   ;;  %vm620_vm7 = vmand %vm618_vm3, %vm619_vm15 }
  0x54   :  { %v1744_v3 = vld [vmem:[%s1838_s2] ss:$0 sm:$0xff]  ;;  %vm1788_vm9 = vmand %vm633_vm1, %vm638_vm8 }
  0x55   :  { %1268 = vmatpush3.bf16.msra.mxu0 %v1431_v30  ;;  %1358 = vmatpush3.bf16.msra.mxu1 %v1434_v37  ;;  %135 = vst [vmem:[#allocation3 + $0x34] sm:$0x1] %v125_v22  ;;  %v1437_v28 = vld [vmem:[#allocation3 + $0x1c] ss:$12 sps:$4 sm:$0xff]   ;;  %v1446_v37 = vld [vmem:[#allocation9] sm:$0xff]  }
  0x56   :  { %1371 = vmatprep.subr.bf16.mxu1 %v1578_v0  ;;  %v1440_v30 = vld [vmem:[#allocation3 + $0x20] ss:$12 sps:$4 sm:$0xff]   ;;  %v1443_v33 = vld [vmem:[#allocation3 + $0x38] ss:$0 sps:$4 sm:$0x11]   ;;  %1298 = vmatprep.subr.bf16.mxu0 %v1445_v36 }
  0x58   :  { %458 = vmatmul.mubr.bf16.vlgmr.msra.gmra.mrb[0].mxu0 %v1435_v26  ;;  %1360 = vmatmul.mubr.bf16.vlgmr.msra.gmra.mrb[0].mxu1 %v1436_v27 }
  0x59   :  { %1363 = vmatprep.mubr.msk.bf16.mxu1 %vm1579_vm0, %v1578_v0  ;;  %465 = vmatprep.mubr.bf16.mxu0 %v1437_v28 }
  0x5a   :  { %1372 = vmatpush3.bf16.msra.mxu1 %v1444_v35  ;;  %1299 = vmatpush3.bf16.msra.mxu0 %v1446_v37 }
  0x5b   :  { %1373 = vmatprep.subr.bf16.mxu1 %v1578_v0  ;;  %1300 = vmatprep.subr.bf16.mxu0 %v1448_v39  ;;  %v612_v39 = vld [vmem:[#allocation2] sm:$0xf] }
  0x5c   :  { %v181_v31 = vld [vmem:[#allocation3 + $0x30] sm:$0x11] }
  0x5d   :  { %v1182_v32 = vcombine.high %v181_v31, %v181_v31  ;;  %v1181_v34 = vcombine.low %v181_v31, %v181_v31 }
  0x5e   :  { %1374 = vmatpush3.bf16.msra.mxu1 %v1447_v38  ;;  %1301 = vmatpush3.bf16.msra.mxu0 %v1449_v40 }
  0x5f   :  { %1375 = vmatprep.subr.bf16.mxu1 %v1578_v0  ;;  %1302 = vmatprep.subr.bf16.mxu0 %v1451_v42 }
  0x60   :  { %466 = vmatmul.mubr.bf16.gmra.mrb[4].mxu0 %v1439_v29  ;;  %1364 = vmatmul.mubr.bf16.gmra.mrb[4].mxu1 %v1440_v30 }
  0x61   :  { %473 = vmatprep.mubr.bf16.mxu0 %v1182_v32  ;;  %1367 = vmatprep.mubr.msk.bf16.mxu1 %vm1579_vm0, %v1578_v0 }
  0x62   :  { %1376 = vmatpush3.bf16.msra.mxu1 %v1450_v41  ;;  %1303 = vmatpush3.bf16.msra.mxu0 %v1452_v44 }
  0x63   :  { %1377 = vmatprep.subr.bf16.mxu1 %v1578_v0  ;;  %1304 = vmatprep.subr.bf16.mxu0 %v1454_v46 }
  0x66   :  { %1378 = vmatpush3.bf16.msra.mxu1 %v1453_v45  ;;  %1305 = vmatpush3.bf16.msra.mxu0 %v1455_v47 }
  0x67   :  { %1379 = vmatprep.subr.bf16.mxu1 %v1578_v0  ;;  %1306 = vmatprep.subr.bf16.mxu0 %v1457_v52 }
  0x68   :  { %474 = vmatmul.mubr.bf16.gmra.mrb[8].mxu0 %v1181_v34  ;;  %1368 = vmatmul.mubr.bf16.gmra.mrb[8].mxu1 %v1443_v33 }
  0x69   :  { %1387 = vmatprep.mubr.msk.bf16.mxu1 %vm1579_vm0, %v1578_v0 }
  0x6a   :  { %1380 = vmatpush3.bf16.msra.mxu1 %v1456_v51  ;;  %1307 = vmatpush3.bf16.msra.mxu0 %v1458_v53 }
  0x6b   :  { %1381 = vmatprep.subr.bf16.mxu1 %v1578_v0  ;;  %1308 = vmatprep.subr.bf16.mxu0 %v1460_v55 }
  0x6e   :  { %1382 = vmatpush3.bf16.msra.mxu1 %v1459_v54  ;;  %1309 = vmatpush3.bf16.msra.mxu0 %v1461_v56 }
  0x6f   :  { %1383 = vmatprep.subr.bf16.mxu1 %v1578_v0  ;;  %1310 = vmatprep.subr.bf16.mxu0 %v1463_v58 }
  0x72   :  { %1384 = vmatpush3.bf16.msra.mxu1 %v1462_v57  ;;  %1311 = vmatpush3.bf16.msra.mxu0 %v1464_v59 }
  0x73   :  { %1385 = vmatprep.subr.bf16.mxu1 %v1578_v0  ;;  %1312 = vmatprep.subr.bf16.mxu0 %v1466_v61 }
  0x76   :  { %1386 = vmatpush3.bf16.msra.mxu1 %v1465_v60  ;;  %1313 = vmatpush3.bf16.msra.mxu0 %v1467_v62 }
 0x12b   :  { %v1269_v63 = vpop.f32.mrb[0].mxu0  ;;  %v515_v1 = vpop.f32.mrb[0].mxu1 }
 0x12c   :  { %v1270_v2 = vpop.f32.mrb[1].mxu0  ;;  %v1361_v4 = vpop.f32.mrb[1].mxu1 }
 0x12d   :  { %v1271_v5 = vadd.f32 %v1270_v2, %v1269_v63  ;;  %v1272_v6 = vpop.f32.mrb[2].mxu0  ;;  %v518_v7 = vpop.f32.mrb[2].mxu1 }
 0x12e   :  { %v1273_v8 = vpop.f32.mrb[3].mxu0  ;;  %v1362_v9 = vpop.f32.mrb[3].mxu1 }
 0x12f   :  { %v460_v10 = vadd.f32 %v1271_v5, %v1744_v3  ;;  %v1274_v11 = vadd.f32 %v1273_v8, %v1272_v6 }
 0x131   :  { %v516_v12 = vadd.f32 %v515_v1, %v460_v10  ;;  %v463_v13 = vadd.f32 %v1274_v11, %v1744_v3 }
 0x133   :  { %v537_v14 = vmax.f32 %v516_v12, 0.0  ;;  %v519_v15 = vadd.f32 %v518_v7, %v463_v13  ;;  %v1275_v16 = vpop.f32.mrb[4].mxu0  ;;  %v523_v17 = vpop.f32.mrb[4].mxu1 }
 0x134   :  { %v1276_v18 = vpop.f32.mrb[5].mxu0  ;;  %v1365_v19 = vpop.f32.mrb[5].mxu1 }
 0x135   :  { %v1248_v20 = vpack.c.bf16 %v537_v14, %v537_v14  ;;  %v538_v21 = vmax.f32 %v519_v15, 0.0  ;;  %v1277_v22 = vadd.f32 %v1276_v18, %v1275_v16  ;;  %v1278_v26 = vpop.f32.mrb[6].mxu0  ;;  %v526_v27 = vpop.f32.mrb[6].mxu1 }
 0x136   :  { %v1279_v28 = vpop.f32.mrb[7].mxu0  ;;  %v1366_v29 = vpop.f32.mrb[7].mxu1 }
 0x137   :  { %v562_v30 = vshrl.u32 %v1248_v20, 16  ;;  %v1249_v31 = vpack.c.bf16 %v538_v21, %v538_v21  ;;  %v468_v32 = vadd.f32 %v1277_v22, %v1744_v3  ;;  %v1280_v33 = vadd.f32 %v1279_v28, %v1278_v26 }
 0x138   :  { %v565_v35 = vshll.u32 %v1248_v20, 16 }
 0x139   :  { %v564_v34 = vrot.slane %v562_v30, 7  ;;  %v570_v36 = vshrl.u32 %v1249_v31, 16  ;;  %v524_v37 = vadd.f32 %v523_v17, %v468_v32  ;;  %v471_v40 = vadd.f32 %v1280_v33, %v1744_v3 }
 0x13a   :  { %v573_v44 = vshll.u32 %v1249_v31, 16 }
 0x13b   :  { %v567_v41 = vor.u32 %v565_v35, %v564_v34  ;;  %v572_v42 = vrot.slane %v570_v36, 7  ;;  %v539_v45 = vmax.f32 %v524_v37, 0.0  ;;  %v1281_v46 = vpop.f32.mrb[8].mxu0  ;;  %v531_v47 = vpop.f32.mrb[8].mxu1  ;;  %v527_v52 = vadd.f32 %v526_v27, %v471_v40 }
 0x13c   :  { %v1282_v53 = vpop.f32.mrb[9].mxu0  ;;  %v1369_v54 = vpop.f32.mrb[9].mxu1  ;;  %v568_v55 = vrot.slane %v564_v34, 4 }
 0x13d   :  { %v613_v56 = vsel %vm1750_vm11, %v567_v41, %v612_v39  ;;  %v575_v57 = vor.u32 %v573_v44, %v572_v42  ;;  %v1250_v58 = vpack.c.bf16 %v539_v45, %v539_v45  ;;  %v1284_v59 = vpop.f32.mrb[10].mxu0  ;;  %v534_v60 = vpop.f32.mrb[10].mxu1  ;;  %v540_v61 = vmax.f32 %v527_v52, 0.0  ;;  %v621_v39 = vld [vmem:[#allocation2 + $0x10] sm:$0x3] }
 0x13e   :  { %614 = vst [vmem:[#allocation2] sm:$0xf] %v613_v56  ;;  %v1283_v62 = vadd.f32 %v1282_v53, %v1281_v46  ;;  %v1285_v63 = vpop.f32.mrb[11].mxu0  ;;  %v1370_v1 = vpop.f32.mrb[11].mxu1  ;;  %v577_v11 = vrot.slane %v572_v42, 4 }
 0x13f   :  { %v576_v2 = vsel %vm1757_vm12, %v568_v55, %v575_v57  ;;  %v579_v4 = vshrl.u32 %v1250_v58, 16  ;;  %v1251_v5 = vpack.c.bf16 %v540_v61, %v540_v61  ;;  %v582_v8 = vshll.u32 %v1250_v58, 16 }
 0x140   :  { %615 = vst [vmem:[#allocation2 + $0x4] sm:$0xf] %v576_v2  ;;  %v476_v6 = vadd.f32 %v1283_v62, %v1744_v3 }
 0x141   :  { %v581_v7 = vrot.slane %v579_v4, 7  ;;  %v588_v9 = vshrl.u32 %v1251_v5, 16  ;;  %v591_v14 = vshll.u32 %v1251_v5, 16 }
 0x142   :  { %v532_v10 = vadd.f32 %v531_v47, %v476_v6 }
 0x143   :  { %v584_v12 = vor.u32 %v582_v8, %v581_v7  ;;  %v590_v13 = vrot.slane %v588_v9, 7  ;;  %v586_v20 = vrot.slane %v581_v7, 4 }
 0x144   :  { %v541_v15 = vmax.f32 %v532_v10, 0.0 }
 0x145   :  { %v717_v16 = vld [vmem:[#allocation2] sm:$0xe]  ;;  %v626_v17 = vld [vmem:[#allocation2] sm:$0x1]  ;;  %v585_v18 = vsel %vm1757_vm12, %v577_v11, %v584_v12  ;;  %v593_v3 = vor.u32 %v591_v14, %v590_v13  ;;  %v595_v38 = vrot.slane %v590_v13, 4 }
 0x146   :  { %v627_v19 = vsel %vm625_vm14, 0, %v626_v17  ;;  %616 = vst [vmem:[#allocation2 + $0x8] sm:$0xf] %v585_v18  ;;  %v1252_v26 = vpack.c.bf16 %v541_v15, %v541_v15  ;;  %v1213_v28 = vrot.slane %v717_v16, 9 }
 0x147   :  { %628 = vst [vmem:[#allocation2] sm:$0x1] %v627_v19  ;;  %v654_v21 = vld [vmem:[#allocation2 + $0x4] sm:$0xf]  ;;  %v594_v30 = vsel %vm1757_vm12, %v586_v20, %v593_v3 }
 0x148   :  { %v718_v22 = vld [vmem:[#allocation2 + $0x4] sm:$0xf]  ;;  %v668_v31 = vshll.u32 %v654_v21, 16  ;;  %v672_v32 = vshrl.u32 %v654_v21, 16  ;;  %617 = vst [vmem:[#allocation2 + $0xc] sm:$0xf] %v594_v30 }
 0x149   :  { %v644_v27 = vld [vmem:[#allocation2 + $0x4] sm:$0xf]  ;;  %v729_v29 = vrot.slane %v718_v22, 5  ;;  %v597_v33 = vshrl.u32 %v1252_v26, 16  ;;  %v600_v37 = vshll.u32 %v1252_v26, 16 }
 0x14a   :  { %649 = vst [vmem:[#allocation3 + $0xc] sm:$0xf] %v644_v27  ;;  %v670_v40 = vrot.slane %v668_v31, 5  ;;  %v674_v41 = vrot.slane %v672_v32, 4 }
 0x14b   :  { %v730_v35 = vsel %vm1691_vm5, %v1213_v28, %v729_v29  ;;  %v599_v36 = vrot.slane %v597_v33, 7  ;;  %v731_v1 = vrot.slane %v729_v29, 4 }
 0x14c   :  { %746 = vst [vmem:[#allocation3 + $0x8] sm:$0xf] %v730_v35  ;;  %v675_v61 = vor.u32 %v674_v41, %v670_v40 }
 0x14d   :  { %v630_v42 = vld [vmem:[#allocation2 + $0x8] sm:$0x1]  ;;  %v602_v44 = vor.u32 %v600_v37, %v599_v36  ;;  %v635_v45 = vld [vmem:[#allocation2 + $0x8] sm:$0x2] }
 0x14e   :  { %v631_v46 = vsel %vm1774_vm2, 0, %v630_v42  ;;  %v636_v47 = vsel %vm634_vm4, 0, %v635_v45  ;;  %v643_v52 = vld [vmem:[#allocation2] sm:$0xf]  ;;  %v676_v7 = vrot.slane %v675_v61, 4  ;;  %v1115_v61 = vunpack.c.l.bf16 %v1673_v23 }
 0x14f   :  { %v653_v53 = vld [vmem:[#allocation2] sm:$0xf]  ;;  %632 = vst [vmem:[#allocation2 + $0x8] sm:$0x1] %v631_v46  ;;  %v603_v54 = vsel %vm1757_vm12, %v595_v38, %v602_v44  ;;  %637 = vst [vmem:[#allocation2 + $0x8] sm:$0x2] %v636_v47 }
 0x150   :  { %648 = vst [vmem:[#allocation3] sm:$0xf] %v643_v52  ;;  %v659_v55 = vshrl.u32 %v653_v53, 16  ;;  %v662_v56 = vshll.u32 %v653_v53, 16  ;;  %v622_v57 = vsel %vm620_vm7, %v603_v54, %v621_v39  ;;  %v646_v58 = vld [vmem:[#allocation2 + $0xc] sm:$0xf] }
 0x151   :  { %623 = vst [vmem:[#allocation2 + $0x10] sm:$0x3] %v622_v57  ;;  %651 = vst [vmem:[#allocation3 + $0x24] sm:$0xf] %v646_v58  ;;  %v656_v62 = vld [vmem:[#allocation2 + $0xc] sm:$0xf] }
 0x152   :  { %v661_v59 = vrot.slane %v659_v55, 4  ;;  %v664_v60 = vrot.slane %v662_v56, 5  ;;  %v720_v2 = vld [vmem:[#allocation2 + $0xc] sm:$0xf]  ;;  %v688_v8 = vshll.u32 %v656_v62, 16  ;;  %v692_v13 = vshrl.u32 %v656_v62, 16 }
 0x153   :  { %v735_v14 = vrot.slane %v720_v2, 5  ;;  %v1116_v62 = vunpack.c.l.bf16 %v1675_v24  ;;  %v1117_v2 = vunpack.c.l.bf16 %v1677_v25 }
 0x154   :  { %v665_v63 = vor.u32 %v664_v60, %v661_v59  ;;  %v690_v27 = vrot.slane %v688_v8, 5  ;;  %v694_v28 = vrot.slane %v692_v13, 4 }
 0x155   :  { %v737_v35 = vrot.slane %v735_v14, 4  ;;  %v1129_v23 = vrot.slane %v1117_v2, 1 }
 0x156   :  { %v719_v4 = vld [vmem:[#allocation2 + $0x8] sm:$0xf]  ;;  %v666_v6 = vrot.slane %v665_v63, 4  ;;  %v695_v32 = vor.u32 %v694_v28, %v690_v27 }
 0x157   :  { %v655_v5 = vld [vmem:[#allocation2 + $0x8] sm:$0xf]  ;;  %v732_v9 = vrot.slane %v719_v4, 5  ;;  %v1469_v39 = vld [vmem:[#allocation3] ss:$12 sps:$4 sm:$0xff]  }
 0x158   :  { %v678_v10 = vshll.u32 %v655_v5, 16  ;;  %v682_v11 = vshrl.u32 %v655_v5, 16  ;;  %v645_v12 = vld [vmem:[#allocation2 + $0x8] sm:$0xf]  ;;  %v640_v15 = vld [vmem:[#allocation2 + $0x10] sm:$0x2]  ;;  %v671_v16 = vsel %vm1702_vm6, %v666_v6, %v670_v40 }
 0x159   :  { %650 = vst [vmem:[#allocation3 + $0x18] sm:$0xf] %v645_v12  ;;  %v647_v17 = vld [vmem:[#allocation2 + $0x10] sm:$0x1]  ;;  %v641_v18 = vsel %vm1788_vm9, 0, %v640_v15  ;;  %v733_v19 = vsel %vm1691_vm5, %v731_v1, %v732_v9  ;;  %v734_v3 = vrot.slane %v732_v9, 4 }
 0x15a   :  { %v680_v20 = vrot.slane %v678_v10, 5  ;;  %712 = vst [vmem:[#allocation3 + $0x4] sm:$0xf] %v671_v16  ;;  %652 = vst [vmem:[#allocation3 + $0x30] sm:$0x1] %v647_v17  ;;  %v684_v21 = vrot.slane %v682_v11, 4  ;;  %v1118_v17 = vunpack.c.l.bf16 %v1695_v48 }
 0x15b   :  { %642 = vst [vmem:[#allocation2 + $0x10] sm:$0x2] %v641_v18  ;;  %747 = vst [vmem:[#allocation3 + $0x14] sm:$0xf] %v733_v19  ;;  %v736_v26 = vsel %vm1691_vm5, %v734_v3, %v735_v14  ;;  %v696_v42 = vrot.slane %v695_v32, 4  ;;  %v1126_v6 = vrot.slane %v1115_v61, 1 }
 0x15c   :  { %v681_v22 = vsel %vm1702_vm6, %v676_v7, %v680_v20  ;;  %748 = vst [vmem:[#allocation3 + $0x20] sm:$0xf] %v736_v26  ;;  %v685_v29 = vor.u32 %v684_v21, %v680_v20  ;;  %v1127_v7 = vrot.slane %v1116_v62, 1  ;;  %v1119_v21 = vunpack.c.l.bf16 %v1697_v49 }
 0x15d   :  { %713 = vst [vmem:[#allocation3 + $0x10] sm:$0xf] %v681_v22 }
 0x15e   :  { %v686_v30 = vrot.slane %v685_v29, 4 }
 0x160   :  { %v691_v31 = vsel %vm1702_vm6, %v686_v30, %v690_v27  ;;  %v1475_v57 = vld [vmem:[#allocation3 + $0x18] ss:$12 sps:$4 sm:$0xff]   ;;  %v1131_v30 = vrot.slane %v1118_v17, 1 }
 0x161   :  { %714 = vst [vmem:[#allocation3 + $0x1c] sm:$0xf] %v691_v31 }
 0x162   :  { %v657_v33 = vld [vmem:[#allocation2 + $0x10] sm:$0x3]  ;;  %v1468_v34 = vld [vmem:[#allocation3 + $0x8] ss:$12 sps:$4 sm:$0xff]  }
 0x163   :  { %v702_v36 = vshrl.u32 %v657_v33, 16  ;;  %v721_v37 = vld [vmem:[#allocation2 + $0x10] sm:$0x3]  ;;  %v698_v38 = vshll.u32 %v657_v33, 16  ;;  %1388 = vmatmul.mubr.bf16.vlgmr.msra.gmra.mrb[12].mxu1 %v1468_v34  ;;  %v1133_v34 = vrot.slane %v1119_v21, 1 }
 0x164   :  { %v1471_v40 = vld [vmem:[#allocation3 + $0x4] ss:$12 sps:$4 sm:$0xff]   ;;  %v738_v41 = vrot.slane %v721_v37, 5  ;;  %1391 = vmatprep.mubr.msk.bf16.mxu1 %vm1579_vm0, %v1578_v0 }
 0x165   :  { %v700_v44 = vrot.slane %v698_v38, 5  ;;  %v704_v45 = vrot.slane %v702_v36, 4  ;;  %1035 = vmatprep.mubr.bf16.mxu0 %v1471_v40 }
 0x166   :  { %v739_v46 = vsel %vm1691_vm5, %v737_v35, %v738_v41  ;;  %v740_v47 = vrot.slane %v738_v41, 4  ;;  %1036 = vmatmul.mubr.bf16.vlgmr.msra.gmra.mrb[12].mxu0 %v1469_v39 }
 0x167   :  { %749 = vst [vmem:[#allocation3 + $0x2c] sm:$0xf] %v739_v46  ;;  %v701_v52 = vsel %vm1702_vm6, %v696_v42, %v700_v44  ;;  %v705_v53 = vor.u32 %v704_v45, %v700_v44 }
 0x168   :  { %715 = vst [vmem:[#allocation3 + $0x28] sm:$0xf] %v701_v52  ;;  %750 = vst [vmem:[#allocation3 + $0x38] sm:$0x1] %v740_v47 }
 0x169   :  { %v706_v54 = vrot.slane %v705_v53, 4 }
 0x16b   :  { %716 = vst [vmem:[#allocation3 + $0x34] sm:$0x1] %v706_v54 }
 0x16e   :  { %v1472_v55 = vld [vmem:[#allocation3 + $0x20] ss:$12 sps:$4 sm:$0xff]  }
 0x16f   :  { %v1473_v56 = vld [vmem:[#allocation3 + $0x1c] ss:$12 sps:$4 sm:$0xff]   ;;  %1392 = vmatmul.mubr.bf16.gmra.mrb[16].mxu1 %v1472_v55  ;;  %v1477_v59 = vld [vmem:[#allocation3 + $0x38] ss:$0 sps:$4 sm:$0x11]  }
 0x170   :  { %1043 = vmatprep.mubr.bf16.mxu0 %v1473_v56  ;;  %1395 = vmatprep.mubr.msk.bf16.mxu1 %vm1579_vm0, %v1578_v0  ;;  %v1214_v0 = vld [vmem:[%s1840_s4] ss:$0 sm:$0xff]  ;;  %vm1125_vm0 = vcmask 1046528   ;;  %s1580_s4 = smov [#allocation10]  }
 0x171   :  { %1044 = vmatmul.mubr.bf16.gmra.mrb[16].mxu0 %v1475_v57  ;;  %v1128_v12 = vsel %vm1125_vm0, %v1126_v6, %v1127_v7  ;;  %v1130_v14 = vsel %vm1125_vm0, %v1127_v7, %v1129_v23  ;;  %v1132_v36 = vsel %vm1125_vm0, %v1129_v23, %v1131_v30  ;;  %v1134_v49 = vsel %vm1125_vm0, %v1131_v30, %v1133_v34  ;;  %s1160_s6 = sshll.u32 %s1580_s4, 4  ;;  %s1161_s6 = int_to_ptr.vmem [resolvable:$true] %s1160_s6 }
 0x172   :  { %v759_v43 = vld [vmem:[#allocation3 + $0x30] sm:$0x11]  ;;  %s1545_s7 = scalar_lea.vmem %s1161_s6, 512  ;;  %p1550_p11 = scmp.lt.s32.totalorder %s1161_s6, %s1161_s6 }
 0x173   :  { %v1222_v58 = vcombine.high %v759_v43, %v759_v43  ;;  %v1221_v50 = vcombine.low %v759_v43, %v759_v43  ;;  %p1546_p10 = scmp.ne.s32.totalorder %s1161_s6, %s1545_s7  ;;  %p1551_p12 = scmp.lt.s32.totalorder %s1545_s7, %s1545_s7 }
 0x175   :  { %1051 = vmatprep.mubr.bf16.mxu0 %v1222_v58  ;;  %p1552_p13 = por %p1551_p12, %p1550_p11 }
 0x177   :  { %1396 = vmatmul.mubr.bf16.gmra.mrb[20].mxu1 %v1477_v59  ;;  %p1553_p0 = pnand %p1552_p13, %p1546_p10 }
 0x179   :  { %1052 = vmatmul.mubr.bf16.gmra.mrb[20].mxu0 %v1221_v50 }
 0x236   :  { %v1093_v60 = vpop.f32.mrb[12].mxu1 }
 0x237   :  { %v1389_v63 = vpop.f32.mrb[13].mxu1 }
 0x238   :  { %v1096_v1 = vpop.f32.mrb[14].mxu1 }
 0x239   :  { %v1314_v51 = vpop.f32.mrb[12].mxu0  ;;  %v1390_v4 = vpop.f32.mrb[15].mxu1 }
 0x23a   :  { %v1315_v5 = vpop.f32.mrb[13].mxu0 }
 0x23b   :  { %v1316_v8 = vadd.f32 %v1315_v5, %v1314_v51  ;;  %v1317_v9 = vpop.f32.mrb[14].mxu0 }
 0x23c   :  { %v1318_v10 = vpop.f32.mrb[15].mxu0 }
 0x23d   :  { %v1038_v11 = vadd.f32 %v1316_v8, %v1214_v0  ;;  %v1319_v24 = vadd.f32 %v1318_v10, %v1317_v9 }
 0x23f   :  { %v1094_v13 = vadd.f32 %v1093_v60, %v1038_v11  ;;  %v1041_v25 = vadd.f32 %v1319_v24, %v1214_v0 }
 0x241   :  { %v1140_v15 = vadd.f32 %v1128_v12, %v1094_v13  ;;  %v1097_v16 = vadd.f32 %v1096_v1, %v1041_v25 }
 0x242   :  { %v1101_v18 = vpop.f32.mrb[16].mxu1 }
 0x243   :  { %v1145_v19 = vmax.f32 %v1140_v15, 0.0  ;;  %v1141_v20 = vadd.f32 %v1130_v14, %v1097_v16  ;;  %v1393_v3 = vpop.f32.mrb[17].mxu1 }
 0x244   :  { %v1104_v22 = vpop.f32.mrb[18].mxu1  ;;  %v1320_v26 = vpop.f32.mrb[16].mxu0 }
 0x245   :  { %1150 = vst [vmem:[#allocation10] sm:$0xff] %v1145_v19  ;;  %v1146_v27 = vmax.f32 %v1141_v20, 0.0  ;;  %v1394_v28 = vpop.f32.mrb[19].mxu1  ;;  %v1321_v29 = vpop.f32.mrb[17].mxu0 }
 0x246   :  { %v1322_v31 = vadd.f32 %v1321_v29, %v1320_v26  ;;  %v1323_v32 = vpop.f32.mrb[18].mxu0 }
 0x247   :  { %1151 = vst [vmem:[#allocation10 + $0x8] sm:$0xff] %v1146_v27  ;;  %v1324_v33 = vpop.f32.mrb[19].mxu0 }
 0x248   :  { %v1046_v35 = vadd.f32 %v1322_v31, %v1214_v0  ;;  %v1325_v48 = vadd.f32 %v1324_v33, %v1323_v32 }
 0x24a   :  { %v1102_v37 = vadd.f32 %v1101_v18, %v1046_v35  ;;  %v1049_v38 = vadd.f32 %v1325_v48, %v1214_v0  ;;  %v1109_v39 = vpop.f32.mrb[20].mxu1 }
 0x24b   :  { %v1397_v40 = vpop.f32.mrb[21].mxu1 }
 0x24c   :  { %v1142_v41 = vadd.f32 %v1132_v36, %v1102_v37  ;;  %v1105_v42 = vadd.f32 %v1104_v22, %v1049_v38  ;;  %v1112_v44 = vpop.f32.mrb[22].mxu1  ;;  %v1326_v45 = vpop.f32.mrb[20].mxu0 }
 0x24d   :  { %v1398_v46 = vpop.f32.mrb[23].mxu1  ;;  %v1327_v47 = vpop.f32.mrb[21].mxu0 }
 0x24e   :  { %v1147_v52 = vmax.f32 %v1142_v41, 0.0  ;;  %v1143_v53 = vadd.f32 %v1134_v49, %v1105_v42  ;;  %v1328_v54 = vadd.f32 %v1327_v47, %v1326_v45  ;;  %v1329_v55 = vpop.f32.mrb[22].mxu0 }
 0x24f   :  { %v1330_v56 = vpop.f32.mrb[23].mxu0 }
 0x250   :  { %1152 = vst [vmem:[#allocation10 + $0xe] sm:$0xfc] %v1147_v52  ;;  %v1148_v57 = vmax.f32 %v1143_v53, 0.0  ;;  %v1054_v43 = vadd.f32 %v1328_v54, %v1214_v0 }
 0x252   :  { %1153 = vst [vmem:[#allocation10 + $0x16] sm:$0xff] %v1148_v57  ;;  %v1110_v58 = vadd.f32 %v1109_v39, %v1054_v43 }
 0x254   :  { %v1144_v59 = vadd.f32 %v1133_v34, %v1110_v58 }
 0x256   :  { %v1149_v50 = vmax.f32 %v1144_v59, 0.0 }
 0x258   :  { %1154 = vst [vmem:[#allocation10 + $0x1e] sm:$0x3] %v1149_v50 }
 0x259   :  { %1556 = shalt.err (!%p1553_p0)
}
 0x25a   :  { %s1557_s10 = scalar_lea.hbm %s1841_s5, 512 }
 0x25b   :  { %p1558_p1 = scmp.ne.s32.totalorder %s1841_s5, %s1557_s10  ;;  %p1561_p2 = scmp.lt.u32.totalorder %s1557_s10, %s1841_s5 }
 0x25d   :  { %p1563_p3 = pnand %p1561_p2, %p1558_p1 }
 0x25f   :  { %1566 = shalt.err (!%p1563_p3)
}
 0x260   :  { %s1581_s15 = smov 128   ;;  %s1582_s16 = smov 8  }
 0x261   :  { %1166 = dma.vmem_to_hbm [thread:$0]  %s1161_s6, 512, %s1841_s5, [#allocation6], %s1581_s15, %s1581_s15, %s1582_s16  }
 0x262   :  { %1571 = dma.done.wait [#allocation6], 512  }
 0x263   :  { %1572 = vsyncadd [#allocation6], 4294966784 }
 0x264   :  { %1170 = vsyncpa [#allocation5], 1 }
 0x265   :  { %1171 = vsyncpa [#allocation8], 1 }
 0x266   :  { %1172 = vsyncpa [#allocation6], 1 }

</bundles_post_ra>
